<compile_context>
chip_gen: v5e
topology: v5e:2x2
jax: 0.10.0
libtpu: 0.0.40
codegen_flags: <defaults>
</compile_context>

<pallas_src>
import jax
import jax.numpy as jnp
from jax.experimental import pallas as pl
from jax.experimental.pallas import tpu as pltpu


def _flatten_copy_kernel(x_ref, o_ref):
    # The flatten itself is a row-major identity on bytes; the kernel's job is
    # just to stream lane-dense (tb, td) tiles through VMEM into the output.
    o_ref[...] = x_ref[...]


def _largest_divisor_tile(n, unit, cap):
    """Largest multiple of `unit` that divides n and is <= cap; else full n.

    Guarantees the (8, 128) BlockSpec constraint: the chosen tile is either a
    multiple of `unit` or equals the full array extent.
    """
    if n % unit != 0 or n <= unit:
        return n
    k = n // unit
    best = 1
    for m in range(1, k + 1):
        if k % m == 0 and m * unit <= cap:
            best = m
    return best * unit


def flatten_forward(x):
    """Pallas implementation of FlattenLayer.forward: (B, ...) -> (B, prod(...))."""
    B = int(x.shape[0])
    D = 1
    for s in x.shape[1:]:
        D *= int(s)

    # Row-major flatten (matches torch .view(B, -1)) is a metadata-only
    # reshape; the kernel then copies the (B, D) slab in lane-dense tiles.
    x2 = jnp.reshape(x, (B, D))

    # Tile choice:
    #  - sublane (batch) tile: multiple of 8, or the full B if B % 8 != 0
    #  - lane (feature) tile: multiple of 128 (lane-dense stores), or full D
    #  - capped so a double-buffered in+out pair stays far under the scoped
    #    VMEM default on every generation (v7x has only 64 MiB physical).
    tb = _largest_divisor_tile(B, 8, 256)
    td = _largest_divisor_tile(D, 128, 16384)

    grid = (B // tb, D // td)

    out = pl.pallas_call(
        _flatten_copy_kernel,
        out_shape=jax.ShapeDtypeStruct((B, D), x.dtype),
        grid_spec=pltpu.PrefetchScalarGridSpec(
            num_scalar_prefetch=0,
            grid=grid,
            in_specs=[pl.BlockSpec((tb, td), lambda i, j: (i, j))],
            out_specs=pl.BlockSpec((tb, td), lambda i, j: (i, j)),
        ),
        compiler_params=pltpu.CompilerParams(
            dimension_semantics=("parallel", "parallel")),
    )(x2)
    return out


if __name__ == "__main__":
    key = jax.random.PRNGKey(0)
    # Small shapes consistent with the module: batch=2, channels=4, spatial=16.
    x = jax.random.normal(key, (2, 4, 16, 16), jnp.float32)

    fwd = jax.jit(flatten_forward)
    y = fwd(x)
    jax.block_until_ready(y)

    ref = x.reshape(x.shape[0], -1)           # == torch x.view(x.shape[0], -1)
    assert y.shape == (2, 4 * 16 * 16)
    assert y.dtype == x.dtype
    assert jnp.array_equal(y, ref)

    print("KERNEL_OK")
</pallas_src>

<mosaic_0001>
module attributes {stable_mosaic.version = 11 : i64} {
  func.func @_flatten_copy_kernel(%arg0: i32, %arg1: i32, %arg2: memref<2x1024xf32, #tpu.memory_space<vmem>>, %arg3: memref<2x1024xf32, #tpu.memory_space<vmem>>) attributes {dimension_semantics = [#tpu.dimension_semantics<parallel>, #tpu.dimension_semantics<parallel>], iteration_bounds = array<i64: 1, 1>, scalar_prefetch = 0 : i64, scratch_operands = 0 : i64, tpu.core_type = #tpu.core_type<tc>, window_params = [{transform_indices = @transform_0, window_bounds = array<i64: 2, 1024>}, {transform_indices = @transform_1, window_bounds = array<i64: 2, 1024>}]} {
    %c0 = arith.constant 0 : index
    %c0_0 = arith.constant 0 : index
    %0 = vector.load %arg2[%c0, %c0_0] : memref<2x1024xf32, #tpu.memory_space<vmem>>, vector<2x1024xf32>
    %c0_1 = arith.constant 0 : index
    %c0_2 = arith.constant 0 : index
    %1 = vector.load %arg3[%c0_1, %c0_2] : memref<2x1024xf32, #tpu.memory_space<vmem>>, vector<2x1024xf32>
    tpu.vector_store %arg3[%c0_1, %c0_2], %0 {strides = array<i32>} : memref<2x1024xf32, #tpu.memory_space<vmem>>, vector<2x1024xf32>,
    return
  }
  func.func @transform_0(%arg0: i32, %arg1: i32) -> (i32, i32) {
    %c0_i32 = arith.constant 0 : i32
    return %arg0, %arg1 : i32, i32
  }
  func.func @transform_1(%arg0: i32, %arg1: i32) -> (i32, i32) {
    %c0_i32 = arith.constant 0 : i32
    return %arg0, %arg1 : i32, i32
  }
}

</mosaic_0001>

<bundles_post_ra>
// kernel: flatten_forward.1
= control target key start
LH: loop header
LB: loop body
LE: loop exit
PB: predicated region body
PF: predicated region fallthrough
CT: control target
= control target key end

     0   :  { %s76_s0 = inlined_call_operand.vmem [shape: f32[2,1024], index: 0, kind: input, shape index: {}]   ;;  %s77_s1 = inlined_call_operand.hbm [shape: f32[2,1024], index: 1, kind: output, shape index: {}]  }
   0x1   :  { %v9_v0 = vld [vmem:[%s76_s0] sm:$0xff]  ;;  %v10_v1 = vld [vmem:[%s76_s0 + $0x8] sm:$0xff] }
   0x2   :  { %6 = vsyncpa [#allocation3], 0  ;;  %s20_s12 = sshll.u32 %s77_s1, 4  ;;  %11 = vst [vmem:[#allocation2] sm:$0xff] %v9_v0  ;;  %s56_s13 = smov [#allocation2]   ;;  %s21_s12 = int_to_ptr.hbm [resolvable:$true] %s20_s12 }
   0x3   :  { %s18_s14 = sshll.u32 %s56_s13, 4  ;;  %12 = vst [vmem:[#allocation2 + $0x8] sm:$0xff] %v10_v1  ;;  %s19_s14 = int_to_ptr.vmem [resolvable:$true] %s18_s14 }
   0x4   :  { %23 = dma.vmem_to_hbm [thread:$0]  %s19_s14, 256, %s21_s12, [#allocation3]  }
   0x5   :  { %54 = dma.done.wait [#allocation3], 256  }
   0x6   :  { %55 = vsyncadd [#allocation3], 4294967040 }
   0x7   :  { %28 = vsyncpa [#allocation3], 1 }

</bundles_post_ra>
